<compile_context>
chip_gen: v7x
topology: tpu7x:2x2x1
jax: 0.10.0
libtpu: 0.0.40
codegen_flags: <defaults>
</compile_context>

<pallas_src>
import functools

import jax
import jax.numpy as jnp
from jax.experimental import pallas as pl
from jax.experimental.pallas import tpu as pltpu


def _round_up(n, m):
    return ((n + m - 1) // m) * m


def _mlp_kernel(n_layers, x_ref, *refs):
    """Fused (Linear -> ReLU -> Dropout[eval])*N -> softmax over one batch tile.

    refs layout: (w_ref, b_ref) * n_layers, out_ref.
    Weights/biases are VMEM-resident across the whole grid; x/out are tiled
    over the batch axis and double-buffered by the BlockSpec pipeline.
    """
    out_ref = refs[-1]
    wb_refs = refs[:-1]

    h = x_ref[...]                        # (TB, in_dim), compute dtype (bf16)
    for i in range(n_layers):
        w = wb_refs[2 * i][...]           # (in_i, out_i), compute dtype
        b = wb_refs[2 * i + 1][...]       # (1, out_i), f32
        # MXU matmul with f32 accumulation; bias add / ReLU stay in f32.
        h = jnp.dot(h, w, preferred_element_type=jnp.float32) + b
        h = jnp.maximum(h, 0.0)           # ReLU
        # TODO(synk): nn.Dropout(0.5) is identity in eval/inference mode;
        # training-mode stochastic masking is intentionally not implemented.
        if i + 1 < n_layers:
            h = h.astype(w.dtype)         # back to bf16 for the next MXU op

    # softmax over the feature axis (F.softmax default dim for a 2-D input).
    m = jnp.max(h, axis=-1, keepdims=True)
    e = jnp.exp(h - m)
    denom = jnp.sum(e, axis=-1, keepdims=True)
    # approx reciprocal -> EUP vrcp slot (otherwise idle); ~1e-3 relative error.
    out_ref[...] = (e * pl.reciprocal(denom, approx=True)).astype(out_ref.dtype)


def mlp_forward(x, weights_t, biases2d, *, block_batch=256):
    """Forward pass.

    x:          (B, input_dim) float array.
    weights_t:  list of (in_i, out_i) arrays, already transposed + cast by
                init_params (NOT PyTorch (out, in) layout).
    biases2d:   list of (1, out_i) f32 arrays.
    """
    n_layers = len(weights_t)
    assert len(biases2d) == n_layers

    batch, in_dim = x.shape
    out_dim = weights_t[-1].shape[1]
    compute_dtype = weights_t[0].dtype

    # Batch tile: multiple of 16 sublanes (bf16 packing). Large tiles amortize
    # per-grid-step overhead and keep the HBM<->VMEM pipeline in the
    # high-roofline regime once batch grows.
    tb = min(block_batch, _round_up(batch, 16))
    tb = _round_up(tb, 16)
    padded_batch = _round_up(batch, tb)

    x_in = x.astype(compute_dtype)
    if padded_batch != batch:
        x_in = jnp.pad(x_in, ((0, padded_batch - batch), (0, 0)))

    grid = (padded_batch // tb,)

    in_specs = [pl.BlockSpec((tb, in_dim), lambda i: (i, 0))]
    args = [x_in]
    for w, b in zip(weights_t, biases2d):
        in_specs.append(pl.BlockSpec(w.shape, lambda i: (0, 0)))   # resident weight
        in_specs.append(pl.BlockSpec(b.shape, lambda i: (0, 0)))   # resident bias
        args.append(w)
        args.append(b)
    out_spec = pl.BlockSpec((tb, out_dim), lambda i: (i, 0))

    # VMEM budget: resident params + double-buffered x/out tiles + activation slack.
    # Capped at 64 MiB so the same budget is valid on v7x (64 MiB physical VMEM).
    param_bytes = sum(int(a.size) * a.dtype.itemsize for a in args[1:])
    tile_bytes = 2 * (tb * in_dim * x_in.dtype.itemsize + tb * out_dim * 4)
    act_bytes = 4 * tb * max(w.shape[1] for w in weights_t) * 4
    vmem_limit = int(min(64 * 2**20,
                         max(16 * 2**20, 2 * (param_bytes + tile_bytes + act_bytes))))

    flops = 2 * padded_batch * sum(w.shape[0] * w.shape[1] for w in weights_t)
    bytes_accessed = (int(x_in.size) * x_in.dtype.itemsize + param_bytes
                      + padded_batch * out_dim * 4)

    out = pl.pallas_call(
        functools.partial(_mlp_kernel, n_layers),
        out_shape=jax.ShapeDtypeStruct((padded_batch, out_dim), jnp.float32),
        grid=grid,
        in_specs=in_specs,
        out_specs=out_spec,
        compiler_params=pltpu.CompilerParams(
            dimension_semantics=("parallel",),   # v7x: shard batch tiles over 2 TCs
            vmem_limit_bytes=vmem_limit,
        ),
        cost_estimate=pl.CostEstimate(
            flops=int(flops),
            transcendentals=int(padded_batch * out_dim),
            bytes_accessed=int(bytes_accessed),
        ),
    )(*args)

    return out[:batch] if padded_batch != batch else out


def init_params(key, input_dim, hidden_structure, output_dim,
                compute_dtype=jnp.bfloat16):
    """PyTorch-like U(-1/sqrt(fan_in), 1/sqrt(fan_in)) init.

    Weights are pre-transposed to (in, out) and pre-cast to the MXU compute
    dtype ONCE here, so the per-call forward path does no parameter
    transposes/casts (pure HBM-traffic savings per the perf review).
    """
    dims = [input_dim] + list(hidden_structure) + [output_dim]
    weights_t, biases2d = [], []
    for n_in, n_out in zip(dims[:-1], dims[1:]):
        key, kw, kb = jax.random.split(key, 3)
        bound = 1.0 / (float(n_in) ** 0.5)
        w = jax.random.uniform(kw, (n_out, n_in), jnp.float32, -bound, bound)
        b = jax.random.uniform(kb, (n_out,), jnp.float32, -bound, bound)
        weights_t.append(jnp.asarray(w.T, compute_dtype))            # (in, out)
        biases2d.append(b.reshape(1, n_out).astype(jnp.float32))     # (1, out)
    return weights_t, biases2d


def _reference(x, weights_t, biases2d):
    """Pure-JAX f32 reference (same bf16-rounded weights, f32 math)."""
    h = x.astype(jnp.float32)
    for w, b in zip(weights_t, biases2d):
        h = jnp.maximum(h @ w.astype(jnp.float32) + b, 0.0)
    return jax.nn.softmax(h, axis=-1)


if __name__ == "__main__":
    # Small shapes consistent with the module: MLP(input_dim=16, hidden=[32, 32], output_dim=8)
    input_dim = 16
    hidden_structure = [32, 32]
    output_dim = 8
    batch = 2

    key = jax.random.PRNGKey(0)
    key, kx = jax.random.split(key)
    x = jax.random.normal(kx, (batch, input_dim), jnp.float32)

    weights_t, biases2d = init_params(key, input_dim, hidden_structure, output_dim)

    out = jax.block_until_ready(mlp_forward(x, weights_t, biases2d))

    assert out.shape == (batch, output_dim)
    # approx=True reciprocal -> row sums match 1 to ~1e-3 relative.
    row_sums = jnp.sum(out, axis=-1)
    assert bool(jnp.all(jnp.abs(row_sums - 1.0) < 5e-3))
    # bf16 matmul operands -> loose absolute tolerance vs the f32 reference.
    ref = _reference(x, weights_t, biases2d)
    assert bool(jnp.all(jnp.abs(out - ref) < 3e-2))

    print("KERNEL_OK")
</pallas_src>

<mosaic_0001>
module attributes {stable_mosaic.version = 11 : i64} {
  func.func @_mlp_kernel(%arg0: i32, %arg1: memref<16x16xbf16, #tpu.memory_space<vmem>>, %arg2: memref<16x32xbf16, #tpu.memory_space<vmem>>, %arg3: memref<1x32xf32, #tpu.memory_space<vmem>>, %arg4: memref<32x32xbf16, #tpu.memory_space<vmem>>, %arg5: memref<1x32xf32, #tpu.memory_space<vmem>>, %arg6: memref<32x8xbf16, #tpu.memory_space<vmem>>, %arg7: memref<1x8xf32, #tpu.memory_space<vmem>>, %arg8: memref<16x8xf32, #tpu.memory_space<vmem>>) attributes {dimension_semantics = [#tpu.dimension_semantics<parallel>], iteration_bounds = array<i64: 1>, scalar_prefetch = 0 : i64, scratch_operands = 0 : i64, tpu.core_type = #tpu.core_type<tc>, window_params = [{transform_indices = @transform_0, window_bounds = array<i64: 16, 16>}, {pipeline_mode = #tpu.pipeline_mode<synchronous>, transform_indices = @transform_1, window_bounds = array<i64: 16, 32>}, {pipeline_mode = #tpu.pipeline_mode<synchronous>, transform_indices = @transform_2, window_bounds = array<i64: 1, 32>}, {pipeline_mode = #tpu.pipeline_mode<synchronous>, transform_indices = @transform_3, window_bounds = array<i64: 32, 32>}, {pipeline_mode = #tpu.pipeline_mode<synchronous>, transform_indices = @transform_4, window_bounds = array<i64: 1, 32>}, {pipeline_mode = #tpu.pipeline_mode<synchronous>, transform_indices = @transform_5, window_bounds = array<i64: 32, 8>}, {pipeline_mode = #tpu.pipeline_mode<synchronous>, transform_indices = @transform_6, window_bounds = array<i64: 1, 8>}, {transform_indices = @transform_7, window_bounds = array<i64: 16, 8>}]} {
    %c0 = arith.constant 0 : index
    %c0_0 = arith.constant 0 : index
    %0 = vector.load %arg1[%c0, %c0_0] : memref<16x16xbf16, #tpu.memory_space<vmem>>, vector<16x16xbf16>
    %c0_1 = arith.constant 0 : index
    %c0_2 = arith.constant 0 : index
    %1 = vector.load %arg2[%c0_1, %c0_2] : memref<16x32xbf16, #tpu.memory_space<vmem>>, vector<16x32xbf16>
    %c0_3 = arith.constant 0 : index
    %c0_4 = arith.constant 0 : index
    %2 = vector.load %arg3[%c0_3, %c0_4] : memref<1x32xf32, #tpu.memory_space<vmem>>, vector<1x32xf32>
    %cst = arith.constant dense<0.000000e+00> : vector<16x32xf32>
    %3 = tpu.matmul %0, %1, %cst {dimension_numbers = #tpu.dot_dimension_numbers<[1], [0], [0], [1], [0, 0, 1, 1], [], []>} : vector<16x16xbf16>, vector<16x32xbf16>, vector<16x32xf32> -> vector<16x32xf32>
    %4 = vector.broadcast %2 : vector<1x32xf32> to vector<16x32xf32>
    %5 = arith.addf %3, %4 : vector<16x32xf32>
    %cst_5 = arith.constant 0.000000e+00 : f32
    %6 = vector.broadcast %cst_5 : f32 to vector<16x32xf32>
    %7 = arith.maximumf %5, %6 : vector<16x32xf32>
    %8 = arith.truncf %7 : vector<16x32xf32> to vector<16x32xbf16>
    %c0_6 = arith.constant 0 : index
    %c0_7 = arith.constant 0 : index
    %9 = vector.load %arg4[%c0_6, %c0_7] : memref<32x32xbf16, #tpu.memory_space<vmem>>, vector<32x32xbf16>
    %c0_8 = arith.constant 0 : index
    %c0_9 = arith.constant 0 : index
    %10 = vector.load %arg5[%c0_8, %c0_9] : memref<1x32xf32, #tpu.memory_space<vmem>>, vector<1x32xf32>
    %cst_10 = arith.constant dense<0.000000e+00> : vector<16x32xf32>
    %11 = tpu.matmul %8, %9, %cst_10 {dimension_numbers = #tpu.dot_dimension_numbers<[1], [0], [0], [1], [0, 0, 1, 1], [], []>} : vector<16x32xbf16>, vector<32x32xbf16>, vector<16x32xf32> -> vector<16x32xf32>
    %12 = vector.broadcast %10 : vector<1x32xf32> to vector<16x32xf32>
    %13 = arith.addf %11, %12 : vector<16x32xf32>
    %cst_11 = arith.constant 0.000000e+00 : f32
    %14 = vector.broadcast %cst_11 : f32 to vector<16x32xf32>
    %15 = arith.maximumf %13, %14 : vector<16x32xf32>
    %16 = arith.truncf %15 : vector<16x32xf32> to vector<16x32xbf16>
    %c0_12 = arith.constant 0 : index
    %c0_13 = arith.constant 0 : index
    %17 = vector.load %arg6[%c0_12, %c0_13] : memref<32x8xbf16, #tpu.memory_space<vmem>>, vector<32x8xbf16>
    %c0_14 = arith.constant 0 : index
    %c0_15 = arith.constant 0 : index
    %18 = vector.load %arg7[%c0_14, %c0_15] : memref<1x8xf32, #tpu.memory_space<vmem>>, vector<1x8xf32>
    %cst_16 = arith.constant dense<0.000000e+00> : vector<16x8xf32>
    %19 = tpu.matmul %16, %17, %cst_16 {dimension_numbers = #tpu.dot_dimension_numbers<[1], [0], [0], [1], [0, 0, 1, 1], [], []>} : vector<16x32xbf16>, vector<32x8xbf16>, vector<16x8xf32> -> vector<16x8xf32>
    %20 = vector.broadcast %18 : vector<1x8xf32> to vector<16x8xf32>
    %21 = arith.addf %19, %20 : vector<16x8xf32>
    %cst_17 = arith.constant 0.000000e+00 : f32
    %22 = vector.broadcast %cst_17 : f32 to vector<16x8xf32>
    %23 = arith.maximumf %21, %22 : vector<16x8xf32>
    %cst_18 = arith.constant dense<0xFF800000> : vector<16xf32>
    %24 = vector.multi_reduction <maximumf>, %23, %cst_18 [1] : vector<16x8xf32> to vector<16xf32>
    %25 = vector.shape_cast %24 : vector<16xf32> to vector<16x1xf32>
    %26 = vector.broadcast %25 : vector<16x1xf32> to vector<16x8xf32>
    %27 = arith.subf %23, %26 : vector<16x8xf32>
    %28 = math.exp %27 : vector<16x8xf32>
    %cst_19 = arith.constant dense<0.000000e+00> : vector<16xf32>
    %29 = vector.multi_reduction <add>, %28, %cst_19 [1] : vector<16x8xf32> to vector<16xf32>
    %30 = vector.shape_cast %29 : vector<16xf32> to vector<16x1xf32>
    %31 = tpu.reciprocal %30 {approx = true} : vector<16x1xf32> -> vector<16x1xf32>
    %32 = vector.broadcast %31 : vector<16x1xf32> to vector<16x8xf32>
    %33 = arith.mulf %28, %32 : vector<16x8xf32>
    %c0_20 = arith.constant 0 : index
    %c0_21 = arith.constant 0 : index
    %34 = vector.load %arg8[%c0_20, %c0_21] : memref<16x8xf32, #tpu.memory_space<vmem>>, vector<16x8xf32>
    tpu.vector_store %arg8[%c0_20, %c0_21], %33 {strides = array<i32>} : memref<16x8xf32, #tpu.memory_space<vmem>>, vector<16x8xf32>,
    return
  }
  func.func @transform_0(%arg0: i32) -> (i32, i32) {
    %c0_i32 = arith.constant 0 : i32
    %c0_i32_0 = arith.constant 0 : i32
    return %arg0, %c0_i32 : i32, i32
  }
  func.func @transform_1(%arg0: i32) -> (i32, i32) {
    %c0_i32 = arith.constant 0 : i32
    %c0_i32_0 = arith.constant 0 : i32
    %c0_i32_1 = arith.constant 0 : i32
    return %c0_i32, %c0_i32_0 : i32, i32
  }
  func.func @transform_2(%arg0: i32) -> (i32, i32) {
    %c0_i32 = arith.constant 0 : i32
    %c0_i32_0 = arith.constant 0 : i32
    %c0_i32_1 = arith.constant 0 : i32
    return %c0_i32, %c0_i32_0 : i32, i32
  }
  func.func @transform_3(%arg0: i32) -> (i32, i32) {
    %c0_i32 = arith.constant 0 : i32
    %c0_i32_0 = arith.constant 0 : i32
    %c0_i32_1 = arith.constant 0 : i32
    return %c0_i32, %c0_i32_0 : i32, i32
  }
  func.func @transform_4(%arg0: i32) -> (i32, i32) {
    %c0_i32 = arith.constant 0 : i32
    %c0_i32_0 = arith.constant 0 : i32
    %c0_i32_1 = arith.constant 0 : i32
    return %c0_i32, %c0_i32_0 : i32, i32
  }
  func.func @transform_5(%arg0: i32) -> (i32, i32) {
    %c0_i32 = arith.constant 0 : i32
    %c0_i32_0 = arith.constant 0 : i32
    %c0_i32_1 = arith.constant 0 : i32
    return %c0_i32, %c0_i32_0 : i32, i32
  }
  func.func @transform_6(%arg0: i32) -> (i32, i32) {
    %c0_i32 = arith.constant 0 : i32
    %c0_i32_0 = arith.constant 0 : i32
    %c0_i32_1 = arith.constant 0 : i32
    return %c0_i32, %c0_i32_0 : i32, i32
  }
  func.func @transform_7(%arg0: i32) -> (i32, i32) {
    %c0_i32 = arith.constant 0 : i32
    %c0_i32_0 = arith.constant 0 : i32
    return %arg0, %c0_i32 : i32, i32
  }
}

</mosaic_0001>

<bundles_post_ra>
// kernel: tpu_custom_call.1
= control target key start
LH: loop header
LB: loop body
LE: loop exit
PB: predicated region body
PF: predicated region fallthrough
CT: control target
= control target key end

     0   :  { %12 = vsyncpa [#allocation3], 0  ;;  %s366_s24 = smov [#allocation2]   ;;  %s461_s0 = inlined_call_operand.vmem [shape: bf16[16,16], index: 0, kind: input, shape index: {}]   ;;  %s462_s1 = inlined_call_operand.hbm [shape: bf16[16,32], index: 1, kind: input, shape index: {}]   ;;  %s463_s2 = inlined_call_operand.vmem [shape: f32[1,32], index: 2, kind: input, shape index: {}]   ;;  %s464_s3 = inlined_call_operand.vmem [shape: bf16[32,32], index: 3, kind: input, shape index: {}]   ;;  %s465_s4 = inlined_call_operand.vmem [shape: f32[1,32], index: 4, kind: input, shape index: {}]   ;;  %s466_s5 = inlined_call_operand.vmem [shape: bf16[32,8], index: 5, kind: input, shape index: {}]   ;;  %s467_s6 = inlined_call_operand.vmem [shape: f32[1,8], index: 6, kind: input, shape index: {}]   ;;  %s468_s7 = inlined_call_operand.vmem [shape: f32[16,8], index: 7, kind: output, shape index: {}]  }
   0x1   :  { %s20_s25 = sshll.u32 %s366_s24, 4  ;;  %s342_s28 = scalar_lea.hbm %s462_s1, 128  ;;  %s21_s25 = int_to_ptr.vmem [resolvable:$true] %s20_s25 }
   0x2   :  { %p343_p0 = scmp.ne.s32.totalorder %s462_s1, %s342_s28  ;;  %p346_p1 = scmp.lt.u32.totalorder %s342_s28, %s462_s1 }
   0x4   :  { %p348_p2 = pnand %p346_p1, %p343_p0 }
   0x6   :  { %351 = shalt.err (!%p348_p2)
}
   0x7   :  { %s352_s10 = scalar_lea.vmem %s21_s25, 128  ;;  %p357_p4 = scmp.lt.s32.totalorder %s21_s25, %s21_s25 }
   0x8   :  { %p353_p3 = scmp.ne.s32.totalorder %s21_s25, %s352_s10  ;;  %p358_p5 = scmp.lt.s32.totalorder %s352_s10, %s352_s10 }
   0xa   :  { %p359_p6 = por %p358_p5, %p357_p4 }
   0xc   :  { %p360_p7 = pnand %p359_p6, %p353_p3 }
   0xe   :  { %363 = shalt.err (!%p360_p7)
}
   0xf   :  { %s367_s11 = smov 64   ;;  %s368_s12 = smov 4  }
  0x10   :  { %26 = dma.hbm_to_vmem [thread:$0]  %s462_s1, 128, %s21_s25, [#allocation3], %s367_s11, %s367_s11, %s368_s12  }
  0x11   :  { %364 = dma.done.wait [#allocation3], 128  }
  0x12   :  { %365 = vsyncadd [#allocation3], 4294967168  ;;  %v369_v0 = vmov 0.0   ;;  %vm370_vm0 = vmmov 0   ;;  %v328_v1 = vld [vmem:[#allocation2] sm:$0xff]   ;;  %vm63_vm1 = vcmask 130048  }
  0x13   :  { %301 = vmatprep.subr.bf16.mxu0 %v369_v0  ;;  %303 = vmatprep.mubr.msk.bf16.mxu0 %vm370_vm0, %v369_v0  ;;  %v329_v2 = vld [vmem:[%s461_s0] sm:$0xff]   ;;  %v331_v4 = vld [vmem:[%s464_s3 + $0x8] sm:$0xff]   ;;  %vm134_vm2 = vcmask 261120   ;;  %vm251_vm3 = vcmask 64512  }
  0x14   :  { %307 = vmatprep.subr.bf16.mxu1 %v369_v0  ;;  %311 = vmatprep.mubr.msk.bf16.mxu1 %vm370_vm0, %v369_v0  ;;  %v330_v3 = vld [vmem:[%s464_s3] sm:$0xff]   ;;  %v333_v16 = vld [vmem:[%s466_s5 + $0x8] sm:$0xff]  }
  0x15   :  { %302 = vmatpush3.bf16.msra.mxu0 %v328_v1  ;;  %308 = vmatpush3.bf16.msra.mxu1 %v330_v3  ;;  %v281_v5 = vld [vmem:[%s463_s2] ss:$0 sm:$0xff] }
  0x16   :  { %315 = vmatprep.subr.bf16.mxu0 %v369_v0  ;;  %309 = vmatprep.subr.bf16.mxu1 %v369_v0  ;;  %v332_v15 = vld [vmem:[%s466_s5] sm:$0xff]  }
  0x17   :  { %v285_v17 = vld [vmem:[%s465_s4] ss:$0 sm:$0xff] }
  0x18   :  { %304 = vmatmul.mubr.msk.bf16.vlgmr.msra.gmra.mrb[0].mxu0 %vm63_vm1, %v329_v2  ;;  %v289_v27 = vld [vmem:[%s467_s6] ss:$0 sm:$0xff] }
  0x19   :  { %319 = vmatprep.mubr.msk.bf16.mxu0 %vm370_vm0, %v369_v0  ;;  %310 = vmatpush3.bf16.msra.mxu1 %v331_v4 }
  0x1a   :  { %316 = vmatpush3.bf16.msra.mxu0 %v332_v15 }
  0x1b   :  { %317 = vmatprep.subr.bf16.mxu0 %v369_v0 }
  0x1e   :  { %318 = vmatpush3.bf16.msra.mxu0 %v333_v16 }
  0xeb   :  { %v101_v6 = vpop.f32.mrb[0].mxu0 }
  0xec   :  { %v102_v7 = vadd.f32 %v281_v5, %v101_v6  ;;  %v305_v8 = vpop.f32.mrb[1].mxu0 }
  0xed   :  { %v104_v9 = vpop.f32.mrb[2].mxu0 }
  0xee   :  { %v105_v10 = vadd.f32 %v281_v5, %v104_v9  ;;  %v306_v11 = vpop.f32.mrb[3].mxu0  ;;  %v108_v12 = vmax.f32 %v102_v7, 0.0 }
  0xf0   :  { %v109_v13 = vmax.f32 %v105_v10, 0.0 }
  0xf2   :  { %v110_v14 = vpack.c.bf16 %v109_v13, %v108_v12 }
  0xf4   :  { %312 = vmatmul.mubr.msk.bf16.vlgmr.msra.gmra.mrb[0].mxu1 %vm134_vm2, %v110_v14 }
 0x1c7   :  { %v172_v18 = vpop.f32.mrb[0].mxu1 }
 0x1c8   :  { %v173_v19 = vadd.f32 %v285_v17, %v172_v18  ;;  %v313_v20 = vpop.f32.mrb[1].mxu1 }
 0x1c9   :  { %v175_v21 = vpop.f32.mrb[2].mxu1 }
 0x1ca   :  { %v176_v22 = vadd.f32 %v285_v17, %v175_v21  ;;  %v314_v23 = vpop.f32.mrb[3].mxu1  ;;  %v179_v24 = vmax.f32 %v173_v19, 0.0 }
 0x1cc   :  { %v180_v25 = vmax.f32 %v176_v22, 0.0 }
 0x1ce   :  { %v181_v26 = vpack.c.bf16 %v180_v25, %v179_v24 }
 0x1d0   :  { %320 = vmatmul.mubr.msk.bf16.vlgmr.msra.gmra.mrb[4].mxu0 %vm134_vm2, %v181_v26 }
 0x2a3   :  { %v242_v28 = vpop.f32.mrb[4].mxu0 }
 0x2a4   :  { %v243_v29 = vadd.f32 %v289_v27, %v242_v28  ;;  %v321_v30 = vpop.f32.mrb[5].mxu0 }
 0x2a5   :  { %v245_v31 = vpop.f32.mrb[6].mxu0 }
 0x2a6   :  { %v249_v32 = vmax.f32 %v243_v29, 0.0  ;;  %v246_v33 = vadd.f32 %v289_v27, %v245_v31  ;;  %v322_v34 = vpop.f32.mrb[7].mxu0 }
 0x2a8   :  { %v250_v35 = vmax.f32 %v246_v33, 0.0  ;;  %v252_v36 = vsel %vm251_vm3, %v249_v32, -inf }
 0x2a9   :  { %253 = vmax.xlane.f32.xlu0 %v252_v36 }
 0x2aa   :  { %v255_v37 = vsel %vm251_vm3, %v250_v35, -inf }
 0x2ad   :  { %256 = vmax.xlane.f32.xlu0 %v255_v37 }
 0x336   :  { %v254_v38 = vpop.xlane.xlu0 %253 }
 0x337   :  { %v258_v39 = vsub.f32 %v249_v32, %v254_v38 }
 0x339   :  { %v260_v40 = vmul.f32 1.442695, %v258_v39 }
 0x33a   :  { %v257_v41 = vpop.xlane.xlu0 %256 }
 0x33b   :  { %334 = vpow2.f32 %v260_v40  ;;  %v259_v42 = vsub.f32 %v250_v35, %v257_v41 }
 0x33d   :  { %v262_v43 = vmul.f32 1.442695, %v259_v42 }
 0x33f   :  { %336 = vpow2.f32 %v262_v43 }
 0x345   :  { %v335_v44 = vpop.eup %334 }
 0x346   :  { %v264_v45 = vsel %vm251_vm3, %v335_v44, 0.0 }
 0x347   :  { %265 = vadd.xlane.f32.xlu1 %v264_v45 }
 0x349   :  { %v337_v46 = vpop.eup %336 }
 0x34a   :  { %v267_v47 = vsel %vm251_vm3, %v337_v46, 0.0 }
 0x34b   :  { %268 = vadd.xlane.f32.xlu1 %v267_v47 }
 0x3d4   :  { %v266_v48 = vpop.xlane.xlu1 %265 }
 0x3d5   :  { %338 = vrcp.f32 %v266_v48 }
 0x3d8   :  { %v269_v49 = vpop.xlane.xlu1 %268 }
 0x3d9   :  { %340 = vrcp.f32 %v269_v49 }
 0x3df   :  { %v339_v50 = vpop.eup %338 }
 0x3e0   :  { %v272_v51 = vmul.f32 %v339_v50, %v335_v44 }
 0x3e2   :  { %274 = vst.msk [vmem:[%s468_s7] sm:$0xff] %vm251_vm3, %v272_v51 }
 0x3e3   :  { %v341_v52 = vpop.eup %340 }
 0x3e4   :  { %v273_v53 = vmul.f32 %v341_v52, %v337_v46 }
 0x3e6   :  { %275 = vst.msk [vmem:[%s468_s7 + $0x8] sm:$0xff] %vm251_vm3, %v273_v53 }
 0x3e7   :  { %280 = vsyncpa [#allocation3], 1 }

</bundles_post_ra>
